<compile_context>
chip_gen: v7x
topology: tpu7x:2x2x1
jax: 0.10.0
libtpu: 0.0.40
codegen_flags: <defaults>
</compile_context>

<pallas_src>
import functools

import jax
import jax.numpy as jnp
from jax import lax
from jax.experimental import pallas as pl
from jax.experimental.pallas import tpu as pltpu

LANE = 128
SUBLANE = 8
NEG_INF = -1e30   # lane mask baked into the packed bias


def _round_up(x, m):
    return (x + m - 1) // m * m


def rnn_chunk_kernel(x_ref, h0_ref, wx_ref, wh_ref, b_ref,
                     out_ref, hfin_ref, p_scr, *, total_T, needs_guard):
    """One grid step = one chunk of Tc timesteps.

    x_ref   : (Tc, Bp, I)      chunk of inputs
    h0_ref  : (Bp, Hp)         initial hidden (read only at chunk 0)
    wx_ref  : (I,  Hp+Op)      fused [hidden|output] input weights  (resident)
    wh_ref  : (Hp, Hp+Op)      fused [hidden|output] hidden weights (resident)
    b_ref   : (1,  Hp+Op)      fused bias; padded output lanes hold -1e30
    out_ref : (Tc, Bp, Op)     per-chunk log-probs
    hfin_ref: (Bp, Hp)         resident recurrent state / final hidden (aliased with h0)
    p_scr   : (Tc, Bp, Hp+Op)  hoisted input projection P = x @ Wx + b
    """
    c = pl.program_id(0)
    chunk, bp, _ = x_ref.shape
    h_pad = hfin_ref.shape[-1]
    wdt = wx_ref.dtype

    # ---- recurrent-state init: the resident output block doubles as the state buffer.
    @pl.when(c == 0)
    def _():
        hfin_ref[...] = h0_ref[...]

    # ---- hoisted input projection (off the serial chain): one MXU-friendly GEMM per chunk.
    xm = x_ref[...].reshape(chunk * bp, -1).astype(wdt)
    p = jnp.dot(xm, wx_ref[...], preferred_element_type=jnp.float32) + b_ref[...]
    p_scr[...] = p.reshape(chunk, bp, -1)

    # ---- serial recurrence: per step only  h @ Wh + P[t]; store raw logits.
    def step(t, h):
        fused = p_scr[t] + jnp.dot(h.astype(wdt), wh_ref[...],
                                   preferred_element_type=jnp.float32)   # (Bp, Hp+Op)
        out_ref[t] = fused[:, h_pad:].astype(out_ref.dtype)              # raw logits
        new_h = fused[:, :h_pad]
        if needs_guard:  # only emitted when T was padded up to a chunk multiple
            valid = (c * chunk + t) < total_T
            new_h = jnp.where(valid, new_h, h)
        return new_h

    h_final = lax.fori_loop(0, chunk, step, hfin_ref[...], unroll=(chunk <= 16))
    hfin_ref[...] = h_final

    # ---- deferred, batched log-softmax over the whole chunk.
    # Padded output lanes already hold -1e30 (from the bias), so no iota/where mask needed.
    logits = out_ref[...]                                    # (Tc, Bp, Op), f32
    m = jnp.max(logits, axis=-1, keepdims=True)
    shifted = logits - m
    lse = jnp.log(jnp.sum(jnp.exp(shifted), axis=-1, keepdims=True))
    out_ref[...] = (shifted - lse).astype(out_ref.dtype)


def pack_params(w_i2h, b_i2h, w_i2o, b_i2o, input_size, hidden_size, output_size,
                weight_dtype=jnp.float32):
    """One-time layout glue (hoisted out of the forward path).

    PyTorch [out, in] Linear weights -> transposed, zero-padded to lane-dense widths,
    fused into a single [hidden | output] weight, row-split into Wx ([I, N]) and
    Wh ([Hp, N]) so the kernel never concatenates its inputs. The padded *output*
    lanes of the fused bias are set to -1e30 so the log-softmax lane mask is free.
    weight_dtype=jnp.bfloat16 is the v6e/v7x fast path (dots bf16, accumulate f32).
    """
    I, H, O = input_size, hidden_size, output_size
    Hp, Op = _round_up(H, LANE), _round_up(O, LANE)

    wh_t = jnp.pad(w_i2h.T.astype(jnp.float32), ((0, 0), (0, Hp - H)))   # [I+H, Hp]
    wo_t = jnp.pad(w_i2o.T.astype(jnp.float32), ((0, 0), (0, Op - O)))   # [I+H, Op]
    w_cat = jnp.concatenate([wh_t, wo_t], axis=1)                        # [I+H, Hp+Op]

    wx = w_cat[:I, :].astype(weight_dtype)                               # [I,  Hp+Op]
    wh = jnp.pad(w_cat[I:, :], ((0, Hp - H), (0, 0))).astype(weight_dtype)  # [Hp, Hp+Op]

    b = jnp.concatenate([
        jnp.pad(b_i2h.astype(jnp.float32), (0, Hp - H)),                       # zeros
        jnp.pad(b_i2o.astype(jnp.float32), (0, Op - O), constant_values=NEG_INF),
    ]).reshape(1, Hp + Op)
    return dict(wx=wx, wh=wh, b=b, dims=(I, H, O, Hp, Op))


def rnn_forward_seq(x_seq, h0, params, chunk=64):
    """Run the RNN cell over a whole sequence in one kernel.

    x_seq: [T, B, I], h0: [B, H] -> (log_probs [T, B, O], h_final [B, H])
    """
    wx, wh, b = params["wx"], params["wh"], params["b"]
    I, H, O, Hp, Op = params["dims"]
    T, B, _ = x_seq.shape
    Bp = _round_up(max(B, SUBLANE), SUBLANE)

    Tc = min(chunk, T)
    n_chunks = pl.cdiv(T, Tc)
    Tp = n_chunks * Tc

    x_p = jnp.pad(x_seq.astype(jnp.float32), ((0, Tp - T), (0, Bp - B), (0, 0)))
    h0_p = jnp.pad(h0.astype(jnp.float32), ((0, Bp - B), (0, Hp - H)))

    kernel = functools.partial(rnn_chunk_kernel, total_T=T, needs_guard=(Tp != T))

    out_p, hfin_p = pl.pallas_call(
        kernel,
        grid=(n_chunks,),
        in_specs=[
            pl.BlockSpec((Tc, Bp, I), lambda c: (c, 0, 0)),     # chunk of inputs
            pl.BlockSpec((Bp, Hp), lambda c: (0, 0)),           # h0 (read at chunk 0)
            pl.BlockSpec((I, Hp + Op), lambda c: (0, 0)),       # Wx (resident in VMEM)
            pl.BlockSpec((Hp, Hp + Op), lambda c: (0, 0)),      # Wh (resident in VMEM)
            pl.BlockSpec((1, Hp + Op), lambda c: (0, 0)),       # fused bias + lane mask
        ],
        out_specs=(
            pl.BlockSpec((Tc, Bp, Op), lambda c: (c, 0, 0)),    # per-chunk log-probs
            pl.BlockSpec((Bp, Hp), lambda c: (0, 0)),           # final hidden (resident state)
        ),
        out_shape=(
            jax.ShapeDtypeStruct((Tp, Bp, Op), jnp.float32),
            jax.ShapeDtypeStruct((Bp, Hp), jnp.float32),
        ),
        scratch_shapes=[pltpu.VMEM((Tc, Bp, Hp + Op), jnp.float32)],   # hoisted x-projection
        input_output_aliases={1: 1},    # h0 HBM buffer reused for the final hidden state
        compiler_params=pltpu.CompilerParams(
            dimension_semantics=("arbitrary",),     # chunks are a serial recurrence
            vmem_limit_bytes=32 << 20),             # explicit limit (v7x-safe headroom)
    )(x_p, h0_p, wx, wh, b)

    return out_p[:T, :B, :O], hfin_p[:B, :H]


def rnn_forward(x, h, params):
    """Single-step forward matching the PyTorch module: (output, hidden)."""
    out, hid = rnn_forward_seq(x[None], h, params)
    return out[0], hid


def _torch_linear_init(key, out_features, in_features):
    """Deterministic init mimicking nn.Linear's U(-1/sqrt(fan_in), 1/sqrt(fan_in))."""
    k1, k2 = jax.random.split(key)
    bound = 1.0 / jnp.sqrt(jnp.float32(in_features))
    w = jax.random.uniform(k1, (out_features, in_features), jnp.float32,
                           minval=-bound, maxval=bound)
    b = jax.random.uniform(k2, (out_features,), jnp.float32,
                           minval=-bound, maxval=bound)
    return w, b


if __name__ == "__main__":
    input_size, hidden_size, output_size = 16, 32, 8
    batch, seq_len = 2, 8

    key = jax.random.PRNGKey(0)
    kx, k_i2h, k_i2o = jax.random.split(key, 3)

    x_seq = jax.random.normal(kx, (seq_len, batch, input_size), jnp.float32)
    h0 = jnp.zeros((batch, hidden_size), jnp.float32)   # init_hidden, broadcast to batch

    w_i2h, b_i2h = _torch_linear_init(k_i2h, hidden_size, input_size + hidden_size)
    w_i2o, b_i2o = _torch_linear_init(k_i2o, output_size, input_size + hidden_size)

    # pure-JAX reference: loop the PyTorch cell semantics over the sequence
    h = h0
    ref_outs = []
    for t in range(seq_len):
        combined = jnp.concatenate([x_seq[t], h], axis=1)
        h = combined @ w_i2h.T + b_i2h
        logits = combined @ w_i2o.T + b_i2o
        ref_outs.append(jax.nn.log_softmax(logits, axis=1))
    ref_out_seq = jnp.stack(ref_outs)
    ref_h_final = h

    # ---- f32 weights: exact-semantics path (safe on v5e/v6e/v7x) ----
    params32 = pack_params(w_i2h, b_i2h, w_i2o, b_i2o,
                           input_size, hidden_size, output_size,
                           weight_dtype=jnp.float32)
    out_seq, h_final = rnn_forward_seq(x_seq, h0, params32)
    jax.block_until_ready((out_seq, h_final))
    assert jnp.allclose(out_seq, ref_out_seq, atol=1e-4, rtol=1e-4), "output mismatch"
    assert jnp.allclose(h_final, ref_h_final, atol=1e-4, rtol=1e-4), "hidden mismatch"

    # single-step path (exact module.forward signature)
    out1, h1 = rnn_forward(x_seq[0], h0, params32)
    jax.block_until_ready((out1, h1))
    assert jnp.allclose(out1, ref_out_seq[0], atol=1e-4, rtol=1e-4), "step output mismatch"

    # ---- bf16 weights: v6e/v7x fast path (dots bf16, accumulate/softmax f32) ----
    params_bf16 = pack_params(w_i2h, b_i2h, w_i2o, b_i2o,
                              input_size, hidden_size, output_size,
                              weight_dtype=jnp.bfloat16)
    out_bf, h_bf = rnn_forward_seq(x_seq, h0, params_bf16)
    jax.block_until_ready((out_bf, h_bf))
    assert jnp.allclose(out_bf, ref_out_seq, atol=1e-1, rtol=1e-1), "bf16 output mismatch"
    assert jnp.allclose(h_bf, ref_h_final, atol=1e-1, rtol=1e-1), "bf16 hidden mismatch"

    print("KERNEL_OK")
</pallas_src>

<mosaic_0001>
module attributes {stable_mosaic.version = 11 : i64} {
  func.func @rnn_chunk_kernel(%arg0: i32, %arg1: memref<8x8x16xf32, #tpu.memory_space<vmem>>, %arg2: memref<8x128xf32, #tpu.memory_space<vmem>>, %arg3: memref<16x256xf32, #tpu.memory_space<vmem>>, %arg4: memref<128x256xf32, #tpu.memory_space<vmem>>, %arg5: memref<1x256xf32, #tpu.memory_space<vmem>>, %arg6: memref<8x8x128xf32, #tpu.memory_space<vmem>>, %arg7: memref<8x128xf32, #tpu.memory_space<vmem>>, %arg8: memref<8x8x256xf32, #tpu.memory_space<vmem>>) attributes {dimension_semantics = [#tpu.dimension_semantics<arbitrary>], iteration_bounds = array<i64: 1>, scalar_prefetch = 0 : i64, scratch_operands = 1 : i64, tpu.core_type = #tpu.core_type<tc>, window_params = [{transform_indices = @transform_0, window_bounds = array<i64: 8, 8, 16>}, {pipeline_mode = #tpu.pipeline_mode<synchronous>, transform_indices = @transform_1, window_bounds = array<i64: 8, 128>}, {pipeline_mode = #tpu.pipeline_mode<synchronous>, transform_indices = @transform_2, window_bounds = array<i64: 16, 256>}, {pipeline_mode = #tpu.pipeline_mode<synchronous>, transform_indices = @transform_3, window_bounds = array<i64: 128, 256>}, {pipeline_mode = #tpu.pipeline_mode<synchronous>, transform_indices = @transform_4, window_bounds = array<i64: 1, 256>}, {transform_indices = @transform_5, window_bounds = array<i64: 8, 8, 128>}, {pipeline_mode = #tpu.pipeline_mode<synchronous>, transform_indices = @transform_6, window_bounds = array<i64: 8, 128>}]} {
    %c0_i32 = arith.constant 0 : i32
    %0 = arith.cmpi eq, %arg0, %c0_i32 : i32
    %1 = arith.extui %0 : i1 to i32
    %c0_i32_0 = arith.constant 0 : i32
    %2 = arith.cmpi ne, %1, %c0_i32_0 : i32
    scf.if %2 {
      %c0_79 = arith.constant 0 : index
      %c0_80 = arith.constant 0 : index
      %122 = vector.load %arg2[%c0_79, %c0_80] : memref<8x128xf32, #tpu.memory_space<vmem>>, vector<8x128xf32>
      %c0_81 = arith.constant 0 : index
      %c0_82 = arith.constant 0 : index
      %123 = vector.load %arg7[%c0_81, %c0_82] : memref<8x128xf32, #tpu.memory_space<vmem>>, vector<8x128xf32>
      tpu.vector_store %arg7[%c0_81, %c0_82], %122 {strides = array<i32>} : memref<8x128xf32, #tpu.memory_space<vmem>>, vector<8x128xf32>,
    } else {
    }
    %c0 = arith.constant 0 : index
    %c0_1 = arith.constant 0 : index
    %c0_2 = arith.constant 0 : index
    %3 = vector.load %arg1[%c0, %c0_1, %c0_2] : memref<8x8x16xf32, #tpu.memory_space<vmem>>, vector<8x8x16xf32>
    %4 = vector.shape_cast %3 : vector<8x8x16xf32> to vector<64x16xf32>
    %c0_3 = arith.constant 0 : index
    %c0_4 = arith.constant 0 : index
    %5 = vector.load %arg3[%c0_3, %c0_4] : memref<16x256xf32, #tpu.memory_space<vmem>>, vector<16x256xf32>
    %cst = arith.constant dense<0.000000e+00> : vector<64x256xf32>
    %6 = tpu.matmul %4, %5, %cst {dimension_numbers = #tpu.dot_dimension_numbers<[1], [0], [0], [1], [0, 0, 1, 1], [], []>} : vector<64x16xf32>, vector<16x256xf32>, vector<64x256xf32> -> vector<64x256xf32>
    %c0_5 = arith.constant 0 : index
    %c0_6 = arith.constant 0 : index
    %7 = vector.load %arg5[%c0_5, %c0_6] : memref<1x256xf32, #tpu.memory_space<vmem>>, vector<1x256xf32>
    %8 = vector.broadcast %7 : vector<1x256xf32> to vector<64x256xf32>
    %9 = arith.addf %6, %8 : vector<64x256xf32>
    %10 = vector.shape_cast %9 : vector<64x256xf32> to vector<8x8x256xf32>
    %c0_7 = arith.constant 0 : index
    %c0_8 = arith.constant 0 : index
    %c0_9 = arith.constant 0 : index
    %11 = vector.load %arg8[%c0_7, %c0_8, %c0_9] : memref<8x8x256xf32, #tpu.memory_space<vmem>>, vector<8x8x256xf32>
    tpu.vector_store %arg8[%c0_7, %c0_8, %c0_9], %10 {strides = array<i32>} : memref<8x8x256xf32, #tpu.memory_space<vmem>>, vector<8x8x256xf32>,
    %c0_10 = arith.constant 0 : index
    %c0_11 = arith.constant 0 : index
    %12 = vector.load %arg7[%c0_10, %c0_11] : memref<8x128xf32, #tpu.memory_space<vmem>>, vector<8x128xf32>
    %c0_i32_12 = arith.constant 0 : i32
    %13 = arith.index_cast %c0_i32_12 : i32 to index
    %c0_13 = arith.constant 0 : index
    %c0_14 = arith.constant 0 : index
    %14 = vector.load %arg8[%13, %c0_13, %c0_14] : memref<8x8x256xf32, #tpu.memory_space<vmem>>, vector<1x8x256xf32>
    %15 = vector.shape_cast %14 : vector<1x8x256xf32> to vector<8x256xf32>
    %c0_15 = arith.constant 0 : index
    %c0_16 = arith.constant 0 : index
    %16 = vector.load %arg4[%c0_15, %c0_16] : memref<128x256xf32, #tpu.memory_space<vmem>>, vector<128x256xf32>
    %cst_17 = arith.constant dense<0.000000e+00> : vector<8x256xf32>
    %17 = tpu.matmul %12, %16, %cst_17 {dimension_numbers = #tpu.dot_dimension_numbers<[1], [0], [0], [1], [0, 0, 1, 1], [], []>} : vector<8x128xf32>, vector<128x256xf32>, vector<8x256xf32> -> vector<8x256xf32>
    %18 = arith.addf %15, %17 : vector<8x256xf32>
    %19 = vector.extract_strided_slice %18 {offsets = [0, 128], sizes = [8, 128], strides = [1, 1]} : vector<8x256xf32> to vector<8x128xf32>
    %20 = arith.index_cast %c0_i32_12 : i32 to index
    %c0_18 = arith.constant 0 : index
    %c0_19 = arith.constant 0 : index
    %21 = vector.load %arg6[%20, %c0_18, %c0_19] : memref<8x8x128xf32, #tpu.memory_space<vmem>>, vector<1x8x128xf32>
    %22 = vector.shape_cast %21 : vector<1x8x128xf32> to vector<8x128xf32>
    %23 = vector.shape_cast %19 : vector<8x128xf32> to vector<1x8x128xf32>
    tpu.vector_store %arg6[%20, %c0_18, %c0_19], %23 {strides = array<i32>} : memref<8x8x128xf32, #tpu.memory_space<vmem>>, vector<1x8x128xf32>,
    %24 = vector.extract_strided_slice %18 {offsets = [0, 0], sizes = [8, 128], strides = [1, 1]} : vector<8x256xf32> to vector<8x128xf32>
    %c1_i32 = arith.constant 1 : i32
    %25 = arith.index_cast %c1_i32 : i32 to index
    %c0_20 = arith.constant 0 : index
    %c0_21 = arith.constant 0 : index
    %26 = vector.load %arg8[%25, %c0_20, %c0_21] : memref<8x8x256xf32, #tpu.memory_space<vmem>>, vector<1x8x256xf32>
    %27 = vector.shape_cast %26 : vector<1x8x256xf32> to vector<8x256xf32>
    %c0_22 = arith.constant 0 : index
    %c0_23 = arith.constant 0 : index
    %28 = vector.load %arg4[%c0_22, %c0_23] : memref<128x256xf32, #tpu.memory_space<vmem>>, vector<128x256xf32>
    %cst_24 = arith.constant dense<0.000000e+00> : vector<8x256xf32>
    %29 = tpu.matmul %24, %28, %cst_24 {dimension_numbers = #tpu.dot_dimension_numbers<[1], [0], [0], [1], [0, 0, 1, 1], [], []>} : vector<8x128xf32>, vector<128x256xf32>, vector<8x256xf32> -> vector<8x256xf32>
    %30 = arith.addf %27, %29 : vector<8x256xf32>
    %31 = vector.extract_strided_slice %30 {offsets = [0, 128], sizes = [8, 128], strides = [1, 1]} : vector<8x256xf32> to vector<8x128xf32>
    %32 = arith.index_cast %c1_i32 : i32 to index
    %c0_25 = arith.constant 0 : index
    %c0_26 = arith.constant 0 : index
    %33 = vector.load %arg6[%32, %c0_25, %c0_26] : memref<8x8x128xf32, #tpu.memory_space<vmem>>, vector<1x8x128xf32>
    %34 = vector.shape_cast %33 : vector<1x8x128xf32> to vector<8x128xf32>
    %35 = vector.shape_cast %31 : vector<8x128xf32> to vector<1x8x128xf32>
    tpu.vector_store %arg6[%32, %c0_25, %c0_26], %35 {strides = array<i32>} : memref<8x8x128xf32, #tpu.memory_space<vmem>>, vector<1x8x128xf32>,
    %36 = vector.extract_strided_slice %30 {offsets = [0, 0], sizes = [8, 128], strides = [1, 1]} : vector<8x256xf32> to vector<8x128xf32>
    %c2_i32 = arith.constant 2 : i32
    %37 = arith.index_cast %c2_i32 : i32 to index
    %c0_27 = arith.constant 0 : index
    %c0_28 = arith.constant 0 : index
    %38 = vector.load %arg8[%37, %c0_27, %c0_28] : memref<8x8x256xf32, #tpu.memory_space<vmem>>, vector<1x8x256xf32>
    %39 = vector.shape_cast %38 : vector<1x8x256xf32> to vector<8x256xf32>
    %c0_29 = arith.constant 0 : index
    %c0_30 = arith.constant 0 : index
    %40 = vector.load %arg4[%c0_29, %c0_30] : memref<128x256xf32, #tpu.memory_space<vmem>>, vector<128x256xf32>
    %cst_31 = arith.constant dense<0.000000e+00> : vector<8x256xf32>
    %41 = tpu.matmul %36, %40, %cst_31 {dimension_numbers = #tpu.dot_dimension_numbers<[1], [0], [0], [1], [0, 0, 1, 1], [], []>} : vector<8x128xf32>, vector<128x256xf32>, vector<8x256xf32> -> vector<8x256xf32>
    %42 = arith.addf %39, %41 : vector<8x256xf32>
    %43 = vector.extract_strided_slice %42 {offsets = [0, 128], sizes = [8, 128], strides = [1, 1]} : vector<8x256xf32> to vector<8x128xf32>
    %44 = arith.index_cast %c2_i32 : i32 to index
    %c0_32 = arith.constant 0 : index
    %c0_33 = arith.constant 0 : index
    %45 = vector.load %arg6[%44, %c0_32, %c0_33] : memref<8x8x128xf32, #tpu.memory_space<vmem>>, vector<1x8x128xf32>
    %46 = vector.shape_cast %45 : vector<1x8x128xf32> to vector<8x128xf32>
    %47 = vector.shape_cast %43 : vector<8x128xf32> to vector<1x8x128xf32>
    tpu.vector_store %arg6[%44, %c0_32, %c0_33], %47 {strides = array<i32>} : memref<8x8x128xf32, #tpu.memory_space<vmem>>, vector<1x8x128xf32>,
    %48 = vector.extract_strided_slice %42 {offsets = [0, 0], sizes = [8, 128], strides = [1, 1]} : vector<8x256xf32> to vector<8x128xf32>
    %c3_i32 = arith.constant 3 : i32
    %49 = arith.index_cast %c3_i32 : i32 to index
    %c0_34 = arith.constant 0 : index
    %c0_35 = arith.constant 0 : index
    %50 = vector.load %arg8[%49, %c0_34, %c0_35] : memref<8x8x256xf32, #tpu.memory_space<vmem>>, vector<1x8x256xf32>
    %51 = vector.shape_cast %50 : vector<1x8x256xf32> to vector<8x256xf32>
    %c0_36 = arith.constant 0 : index
    %c0_37 = arith.constant 0 : index
    %52 = vector.load %arg4[%c0_36, %c0_37] : memref<128x256xf32, #tpu.memory_space<vmem>>, vector<128x256xf32>
    %cst_38 = arith.constant dense<0.000000e+00> : vector<8x256xf32>
    %53 = tpu.matmul %48, %52, %cst_38 {dimension_numbers = #tpu.dot_dimension_numbers<[1], [0], [0], [1], [0, 0, 1, 1], [], []>} : vector<8x128xf32>, vector<128x256xf32>, vector<8x256xf32> -> vector<8x256xf32>
    %54 = arith.addf %51, %53 : vector<8x256xf32>
    %55 = vector.extract_strided_slice %54 {offsets = [0, 128], sizes = [8, 128], strides = [1, 1]} : vector<8x256xf32> to vector<8x128xf32>
    %56 = arith.index_cast %c3_i32 : i32 to index
    %c0_39 = arith.constant 0 : index
    %c0_40 = arith.constant 0 : index
    %57 = vector.load %arg6[%56, %c0_39, %c0_40] : memref<8x8x128xf32, #tpu.memory_space<vmem>>, vector<1x8x128xf32>
    %58 = vector.shape_cast %57 : vector<1x8x128xf32> to vector<8x128xf32>
    %59 = vector.shape_cast %55 : vector<8x128xf32> to vector<1x8x128xf32>
    tpu.vector_store %arg6[%56, %c0_39, %c0_40], %59 {strides = array<i32>} : memref<8x8x128xf32, #tpu.memory_space<vmem>>, vector<1x8x128xf32>,
    %60 = vector.extract_strided_slice %54 {offsets = [0, 0], sizes = [8, 128], strides = [1, 1]} : vector<8x256xf32> to vector<8x128xf32>
    %c4_i32 = arith.constant 4 : i32
    %61 = arith.index_cast %c4_i32 : i32 to index
    %c0_41 = arith.constant 0 : index
    %c0_42 = arith.constant 0 : index
    %62 = vector.load %arg8[%61, %c0_41, %c0_42] : memref<8x8x256xf32, #tpu.memory_space<vmem>>, vector<1x8x256xf32>
    %63 = vector.shape_cast %62 : vector<1x8x256xf32> to vector<8x256xf32>
    %c0_43 = arith.constant 0 : index
    %c0_44 = arith.constant 0 : index
    %64 = vector.load %arg4[%c0_43, %c0_44] : memref<128x256xf32, #tpu.memory_space<vmem>>, vector<128x256xf32>
    %cst_45 = arith.constant dense<0.000000e+00> : vector<8x256xf32>
    %65 = tpu.matmul %60, %64, %cst_45 {dimension_numbers = #tpu.dot_dimension_numbers<[1], [0], [0], [1], [0, 0, 1, 1], [], []>} : vector<8x128xf32>, vector<128x256xf32>, vector<8x256xf32> -> vector<8x256xf32>
    %66 = arith.addf %63, %65 : vector<8x256xf32>
    %67 = vector.extract_strided_slice %66 {offsets = [0, 128], sizes = [8, 128], strides = [1, 1]} : vector<8x256xf32> to vector<8x128xf32>
    %68 = arith.index_cast %c4_i32 : i32 to index
    %c0_46 = arith.constant 0 : index
    %c0_47 = arith.constant 0 : index
    %69 = vector.load %arg6[%68, %c0_46, %c0_47] : memref<8x8x128xf32, #tpu.memory_space<vmem>>, vector<1x8x128xf32>
    %70 = vector.shape_cast %69 : vector<1x8x128xf32> to vector<8x128xf32>
    %71 = vector.shape_cast %67 : vector<8x128xf32> to vector<1x8x128xf32>
    tpu.vector_store %arg6[%68, %c0_46, %c0_47], %71 {strides = array<i32>} : memref<8x8x128xf32, #tpu.memory_space<vmem>>, vector<1x8x128xf32>,
    %72 = vector.extract_strided_slice %66 {offsets = [0, 0], sizes = [8, 128], strides = [1, 1]} : vector<8x256xf32> to vector<8x128xf32>
    %c5_i32 = arith.constant 5 : i32
    %73 = arith.index_cast %c5_i32 : i32 to index
    %c0_48 = arith.constant 0 : index
    %c0_49 = arith.constant 0 : index
    %74 = vector.load %arg8[%73, %c0_48, %c0_49] : memref<8x8x256xf32, #tpu.memory_space<vmem>>, vector<1x8x256xf32>
    %75 = vector.shape_cast %74 : vector<1x8x256xf32> to vector<8x256xf32>
    %c0_50 = arith.constant 0 : index
    %c0_51 = arith.constant 0 : index
    %76 = vector.load %arg4[%c0_50, %c0_51] : memref<128x256xf32, #tpu.memory_space<vmem>>, vector<128x256xf32>
    %cst_52 = arith.constant dense<0.000000e+00> : vector<8x256xf32>
    %77 = tpu.matmul %72, %76, %cst_52 {dimension_numbers = #tpu.dot_dimension_numbers<[1], [0], [0], [1], [0, 0, 1, 1], [], []>} : vector<8x128xf32>, vector<128x256xf32>, vector<8x256xf32> -> vector<8x256xf32>
    %78 = arith.addf %75, %77 : vector<8x256xf32>
    %79 = vector.extract_strided_slice %78 {offsets = [0, 128], sizes = [8, 128], strides = [1, 1]} : vector<8x256xf32> to vector<8x128xf32>
    %80 = arith.index_cast %c5_i32 : i32 to index
    %c0_53 = arith.constant 0 : index
    %c0_54 = arith.constant 0 : index
    %81 = vector.load %arg6[%80, %c0_53, %c0_54] : memref<8x8x128xf32, #tpu.memory_space<vmem>>, vector<1x8x128xf32>
    %82 = vector.shape_cast %81 : vector<1x8x128xf32> to vector<8x128xf32>
    %83 = vector.shape_cast %79 : vector<8x128xf32> to vector<1x8x128xf32>
    tpu.vector_store %arg6[%80, %c0_53, %c0_54], %83 {strides = array<i32>} : memref<8x8x128xf32, #tpu.memory_space<vmem>>, vector<1x8x128xf32>,
    %84 = vector.extract_strided_slice %78 {offsets = [0, 0], sizes = [8, 128], strides = [1, 1]} : vector<8x256xf32> to vector<8x128xf32>
    %c6_i32 = arith.constant 6 : i32
    %85 = arith.index_cast %c6_i32 : i32 to index
    %c0_55 = arith.constant 0 : index
    %c0_56 = arith.constant 0 : index
    %86 = vector.load %arg8[%85, %c0_55, %c0_56] : memref<8x8x256xf32, #tpu.memory_space<vmem>>, vector<1x8x256xf32>
    %87 = vector.shape_cast %86 : vector<1x8x256xf32> to vector<8x256xf32>
    %c0_57 = arith.constant 0 : index
    %c0_58 = arith.constant 0 : index
    %88 = vector.load %arg4[%c0_57, %c0_58] : memref<128x256xf32, #tpu.memory_space<vmem>>, vector<128x256xf32>
    %cst_59 = arith.constant dense<0.000000e+00> : vector<8x256xf32>
    %89 = tpu.matmul %84, %88, %cst_59 {dimension_numbers = #tpu.dot_dimension_numbers<[1], [0], [0], [1], [0, 0, 1, 1], [], []>} : vector<8x128xf32>, vector<128x256xf32>, vector<8x256xf32> -> vector<8x256xf32>
    %90 = arith.addf %87, %89 : vector<8x256xf32>
    %91 = vector.extract_strided_slice %90 {offsets = [0, 128], sizes = [8, 128], strides = [1, 1]} : vector<8x256xf32> to vector<8x128xf32>
    %92 = arith.index_cast %c6_i32 : i32 to index
    %c0_60 = arith.constant 0 : index
    %c0_61 = arith.constant 0 : index
    %93 = vector.load %arg6[%92, %c0_60, %c0_61] : memref<8x8x128xf32, #tpu.memory_space<vmem>>, vector<1x8x128xf32>
    %94 = vector.shape_cast %93 : vector<1x8x128xf32> to vector<8x128xf32>
    %95 = vector.shape_cast %91 : vector<8x128xf32> to vector<1x8x128xf32>
    tpu.vector_store %arg6[%92, %c0_60, %c0_61], %95 {strides = array<i32>} : memref<8x8x128xf32, #tpu.memory_space<vmem>>, vector<1x8x128xf32>,
    %96 = vector.extract_strided_slice %90 {offsets = [0, 0], sizes = [8, 128], strides = [1, 1]} : vector<8x256xf32> to vector<8x128xf32>
    %c7_i32 = arith.constant 7 : i32
    %97 = arith.index_cast %c7_i32 : i32 to index
    %c0_62 = arith.constant 0 : index
    %c0_63 = arith.constant 0 : index
    %98 = vector.load %arg8[%97, %c0_62, %c0_63] : memref<8x8x256xf32, #tpu.memory_space<vmem>>, vector<1x8x256xf32>
    %99 = vector.shape_cast %98 : vector<1x8x256xf32> to vector<8x256xf32>
    %c0_64 = arith.constant 0 : index
    %c0_65 = arith.constant 0 : index
    %100 = vector.load %arg4[%c0_64, %c0_65] : memref<128x256xf32, #tpu.memory_space<vmem>>, vector<128x256xf32>
    %cst_66 = arith.constant dense<0.000000e+00> : vector<8x256xf32>
    %101 = tpu.matmul %96, %100, %cst_66 {dimension_numbers = #tpu.dot_dimension_numbers<[1], [0], [0], [1], [0, 0, 1, 1], [], []>} : vector<8x128xf32>, vector<128x256xf32>, vector<8x256xf32> -> vector<8x256xf32>
    %102 = arith.addf %99, %101 : vector<8x256xf32>
    %103 = vector.extract_strided_slice %102 {offsets = [0, 128], sizes = [8, 128], strides = [1, 1]} : vector<8x256xf32> to vector<8x128xf32>
    %104 = arith.index_cast %c7_i32 : i32 to index
    %c0_67 = arith.constant 0 : index
    %c0_68 = arith.constant 0 : index
    %105 = vector.load %arg6[%104, %c0_67, %c0_68] : memref<8x8x128xf32, #tpu.memory_space<vmem>>, vector<1x8x128xf32>
    %106 = vector.shape_cast %105 : vector<1x8x128xf32> to vector<8x128xf32>
    %107 = vector.shape_cast %103 : vector<8x128xf32> to vector<1x8x128xf32>
    tpu.vector_store %arg6[%104, %c0_67, %c0_68], %107 {strides = array<i32>} : memref<8x8x128xf32, #tpu.memory_space<vmem>>, vector<1x8x128xf32>,
    %108 = vector.extract_strided_slice %102 {offsets = [0, 0], sizes = [8, 128], strides = [1, 1]} : vector<8x256xf32> to vector<8x128xf32>
    %c8_i32 = arith.constant 8 : i32
    %c0_69 = arith.constant 0 : index
    %c0_70 = arith.constant 0 : index
    %109 = vector.load %arg7[%c0_69, %c0_70] : memref<8x128xf32, #tpu.memory_space<vmem>>, vector<8x128xf32>
    tpu.vector_store %arg7[%c0_69, %c0_70], %108 {strides = array<i32>} : memref<8x128xf32, #tpu.memory_space<vmem>>, vector<8x128xf32>,
    %c0_71 = arith.constant 0 : index
    %c0_72 = arith.constant 0 : index
    %c0_73 = arith.constant 0 : index
    %110 = vector.load %arg6[%c0_71, %c0_72, %c0_73] : memref<8x8x128xf32, #tpu.memory_space<vmem>>, vector<8x8x128xf32>
    %cst_74 = arith.constant dense<0xFF800000> : vector<8x8xf32>
    %111 = vector.multi_reduction <maximumf>, %110, %cst_74 [2] : vector<8x8x128xf32> to vector<8x8xf32>
    %112 = vector.shape_cast %111 : vector<8x8xf32> to vector<8x8x1xf32>
    %113 = vector.broadcast %112 : vector<8x8x1xf32> to vector<8x8x128xf32>
    %114 = arith.subf %110, %113 : vector<8x8x128xf32>
    %115 = math.exp %114 : vector<8x8x128xf32>
    %cst_75 = arith.constant dense<0.000000e+00> : vector<8x8xf32>
    %116 = vector.multi_reduction <add>, %115, %cst_75 [2] : vector<8x8x128xf32> to vector<8x8xf32>
    %117 = vector.shape_cast %116 : vector<8x8xf32> to vector<8x8x1xf32>
    %118 = math.log %117 : vector<8x8x1xf32>
    %119 = vector.broadcast %118 : vector<8x8x1xf32> to vector<8x8x128xf32>
    %120 = arith.subf %114, %119 : vector<8x8x128xf32>
    %c0_76 = arith.constant 0 : index
    %c0_77 = arith.constant 0 : index
    %c0_78 = arith.constant 0 : index
    %121 = vector.load %arg6[%c0_76, %c0_77, %c0_78] : memref<8x8x128xf32, #tpu.memory_space<vmem>>, vector<8x8x128xf32>
    tpu.vector_store %arg6[%c0_76, %c0_77, %c0_78], %120 {strides = array<i32>} : memref<8x8x128xf32, #tpu.memory_space<vmem>>, vector<8x8x128xf32>,
    return
  }
  func.func @transform_0(%arg0: i32) -> (i32, i32, i32) {
    %c0_i32 = arith.constant 0 : i32
    %c0_i32_0 = arith.constant 0 : i32
    %c0_i32_1 = arith.constant 0 : i32
    return %arg0, %c0_i32, %c0_i32_0 : i32, i32, i32
  }
  func.func @transform_1(%arg0: i32) -> (i32, i32) {
    %c0_i32 = arith.constant 0 : i32
    %c0_i32_0 = arith.constant 0 : i32
    %c0_i32_1 = arith.constant 0 : i32
    return %c0_i32, %c0_i32_0 : i32, i32
  }
  func.func @transform_2(%arg0: i32) -> (i32, i32) {
    %c0_i32 = arith.constant 0 : i32
    %c0_i32_0 = arith.constant 0 : i32
    %c0_i32_1 = arith.constant 0 : i32
    return %c0_i32, %c0_i32_0 : i32, i32
  }
  func.func @transform_3(%arg0: i32) -> (i32, i32) {
    %c0_i32 = arith.constant 0 : i32
    %c0_i32_0 = arith.constant 0 : i32
    %c0_i32_1 = arith.constant 0 : i32
    return %c0_i32, %c0_i32_0 : i32, i32
  }
  func.func @transform_4(%arg0: i32) -> (i32, i32) {
    %c0_i32 = arith.constant 0 : i32
    %c0_i32_0 = arith.constant 0 : i32
    %c0_i32_1 = arith.constant 0 : i32
    return %c0_i32, %c0_i32_0 : i32, i32
  }
  func.func @transform_5(%arg0: i32) -> (i32, i32, i32) {
    %c0_i32 = arith.constant 0 : i32
    %c0_i32_0 = arith.constant 0 : i32
    %c0_i32_1 = arith.constant 0 : i32
    return %arg0, %c0_i32, %c0_i32_0 : i32, i32, i32
  }
  func.func @transform_6(%arg0: i32) -> (i32, i32) {
    %c0_i32 = arith.constant 0 : i32
    %c0_i32_0 = arith.constant 0 : i32
    %c0_i32_1 = arith.constant 0 : i32
    return %c0_i32, %c0_i32_0 : i32, i32
  }
}

</mosaic_0001>

<bundles_post_ra>
// kernel: tpu_custom_call.1
= control target key start
LH: loop header
LB: loop body
LE: loop exit
PB: predicated region body
PF: predicated region fallthrough
CT: control target
= control target key end

     0   :  { %12 = vsyncpa [#allocation4], 0  ;;  %s2101_s0 = inlined_call_operand.hbm [shape: f32[8,8,16], index: 0, kind: input, shape index: {}]   ;;  %s2102_s1 = inlined_call_operand.hbm [shape: f32[8,128], index: 1, kind: input, shape index: {}, may-alias: {1,6}]   ;;  %s2103_s2 = inlined_call_operand.hbm [shape: f32[16,256], index: 2, kind: input, shape index: {}]   ;;  %s2104_s3 = inlined_call_operand.hbm [shape: f32[128,256], index: 3, kind: input, shape index: {}]   ;;  %s2105_s4 = inlined_call_operand.vmem [shape: f32[1,256], index: 4, kind: input, shape index: {}]   ;;  %s2106_s5 = inlined_call_operand.hbm [shape: f32[8,8,128], index: 5, kind: output, shape index: {0}]   ;;  %s2107_s6 = inlined_call_operand.hbm [shape: f32[8,128], index: 6, kind: output, shape index: {1}, may-alias: {1,6}]  }
   0x1   :  { %13 = vsyncpa [#allocation7], 0 }
   0x2   :  { %14 = vsyncpa [#allocation10], 0 }
   0x3   :  { %15 = vsyncpa [#allocation5], 0 }
   0x4   :  { %16 = vsyncpa [#allocation13], 0  ;;  %s1755_s21 = smov [#allocation6]   ;;  %s1756_s23 = smov [#allocation3]  }
   0x5   :  { %s35_s22 = sshll.u32 %s1755_s21, 4  ;;  %s22_s24 = sshll.u32 %s1756_s23, 4  ;;  %s36_s22 = int_to_ptr.vmem [resolvable:$true] %s35_s22  ;;  %s1801_s24 = int_to_ptr.vmem [resolvable:$true] %s22_s24 }
   0x6   :  { %s1613_s27 = scalar_lea.hbm %s2102_s1, 128 }
   0x7   :  { %p1614_p0 = scmp.ne.s32.totalorder %s2102_s1, %s1613_s27  ;;  %p1617_p1 = scmp.lt.u32.totalorder %s1613_s27, %s2102_s1 }
   0x9   :  { %p1619_p2 = pnand %p1617_p1, %p1614_p0 }
   0xb   :  { %1622 = shalt.err (!%p1619_p2)
}
   0xc   :  { %s1623_s8 = scalar_lea.vmem %s36_s22, 128  ;;  %p1628_p4 = scmp.lt.s32.totalorder %s36_s22, %s36_s22 }
   0xd   :  { %p1624_p3 = scmp.ne.s32.totalorder %s36_s22, %s1623_s8  ;;  %p1629_p5 = scmp.lt.s32.totalorder %s1623_s8, %s1623_s8 }
   0xf   :  { %p1630_p6 = por %p1629_p5, %p1628_p4 }
  0x11   :  { %p1631_p7 = pnand %p1630_p6, %p1624_p3 }
  0x13   :  { %1634 = shalt.err (!%p1631_p7)
}
  0x14   :  { %38 = dma.hbm_to_vmem [thread:$0]  %s2102_s1, 128, %s36_s22, [#allocation7]  }
  0x15   :  { %s1635_s13 = scalar_lea.hbm %s2101_s0, 1024 }
  0x16   :  { %p1636_p8 = scmp.ne.s32.totalorder %s2101_s0, %s1635_s13  ;;  %p1639_p9 = scmp.lt.u32.totalorder %s1635_s13, %s2101_s0 }
  0x18   :  { %p1641_p10 = pnand %p1639_p9, %p1636_p8 }
  0x1a   :  { %1644 = shalt.err (!%p1641_p10)
}
  0x1b   :  { %s1645_s18 = scalar_lea.vmem %s1801_s24, 1024  ;;  %p1650_p12 = scmp.lt.s32.totalorder %s1801_s24, %s1801_s24 }
  0x1c   :  { %p1646_p11 = scmp.ne.s32.totalorder %s1801_s24, %s1645_s18  ;;  %p1651_p13 = scmp.lt.s32.totalorder %s1645_s18, %s1645_s18 }
  0x1e   :  { %p1652_p0 = por %p1651_p13, %p1650_p12 }
  0x20   :  { %p1653_p1 = pnand %p1652_p0, %p1646_p11 }
  0x22   :  { %1656 = shalt.err (!%p1653_p1)
}
  0x23   :  { %s1757_s1 = smov 128   ;;  %s1758_s19 = smov 8  }
  0x24   :  { %28 = dma.hbm_to_vmem [thread:$0]  %s2101_s0, 1024, %s1801_s24, [#allocation4], %s1757_s1, %s1757_s1, %s1758_s19  }
  0x25   :  { %s1759_s22 = smov [#allocation8]   ;;  %s1657_s27 = scalar_lea.hbm %s2103_s2, 512 }
  0x26   :  { %s44_s23 = sshll.u32 %s1759_s22, 4  ;;  %p1658_p2 = scmp.ne.s32.totalorder %s2103_s2, %s1657_s27  ;;  %s45_s23 = int_to_ptr.vmem [resolvable:$true] %s44_s23 }
  0x27   :  { %p1661_p3 = scmp.lt.u32.totalorder %s1657_s27, %s2103_s2 }
  0x29   :  { %p1663_p4 = pnand %p1661_p3, %p1658_p2 }
  0x2b   :  { %1666 = shalt.err (!%p1663_p4)
}
  0x2c   :  { %s1667_s8 = scalar_lea.vmem %s45_s23, 512  ;;  %p1672_p6 = scmp.lt.s32.totalorder %s45_s23, %s45_s23 }
  0x2d   :  { %p1668_p5 = scmp.ne.s32.totalorder %s45_s23, %s1667_s8  ;;  %p1673_p7 = scmp.lt.s32.totalorder %s1667_s8, %s1667_s8 }
  0x2f   :  { %p1674_p8 = por %p1673_p7, %p1672_p6 }
  0x31   :  { %p1675_p9 = pnand %p1674_p8, %p1668_p5 }
  0x33   :  { %1678 = shalt.err (!%p1675_p9)
}
  0x34   :  { %s1760_s0 = smov 256   ;;  %s1761_s24 = smov 16  }
  0x35   :  { %50 = dma.hbm_to_vmem [thread:$0]  %s2103_s2, 512, %s45_s23, [#allocation7], %s1760_s0, %s1760_s0, %s1761_s24  }
  0x36   :  { %s1762_s11 = smov [#allocation9]   ;;  %s1679_s15 = scalar_lea.hbm %s2104_s3, 4096 }
  0x37   :  { %s56_s12 = sshll.u32 %s1762_s11, 4  ;;  %p1680_p10 = scmp.ne.s32.totalorder %s2104_s3, %s1679_s15  ;;  %s57_s12 = int_to_ptr.vmem [resolvable:$true] %s56_s12 }
  0x38   :  { %p1683_p11 = scmp.lt.u32.totalorder %s1679_s15, %s2104_s3 }
  0x3a   :  { %p1685_p12 = pnand %p1683_p11, %p1680_p10 }
  0x3c   :  { %1688 = shalt.err (!%p1685_p12)
}
  0x3d   :  { %s1689_s21 = scalar_lea.vmem %s57_s12, 4096  ;;  %p1694_p0 = scmp.lt.s32.totalorder %s57_s12, %s57_s12 }
  0x3e   :  { %p1690_p13 = scmp.ne.s32.totalorder %s57_s12, %s1689_s21  ;;  %p1695_p1 = scmp.lt.s32.totalorder %s1689_s21, %s1689_s21 }
  0x40   :  { %p1696_p2 = por %p1695_p1, %p1694_p0 }
  0x42   :  { %p1697_p3 = pnand %p1696_p2, %p1690_p13 }
  0x44   :  { %1700 = shalt.err (!%p1697_p3)
}
  0x45   :  { %62 = dma.hbm_to_vmem [thread:$0]  %s2104_s3, 4096, %s57_s12, [#allocation10], %s1760_s0, %s1760_s0, %s1761_s24  }
  0x46   :  { %1745 = dma.done.wait [#allocation4], 1024  }
  0x47   :  { %1746 = vsyncadd [#allocation4], 4294966272 }
  0x48   :  { %1747 = dma.done.wait [#allocation7], 640  }
  0x49   :  { %1748 = vsyncadd [#allocation7], 4294966656 }
  0x4a   :  { %1749 = dma.done.wait [#allocation10], 4096  }
  0x4b   :  { %1750 = vsyncadd [#allocation10], 4294963200  ;;  %v1763_v0 = vmov 0.0   ;;  %v265_v1 = vld [vmem:[#allocation9 + $0x8] sm:$0xff]  ;;  %v267_v2 = vld [vmem:[#allocation9 + $0x18] sm:$0xff]  ;;  %vm107_vm0 = vcmask 130048   ;;  %v97_v58 = vlaneseq }
  0x4c   :  { %196 = vmatprep.mubr.f32.mxu0 %v1763_v0  ;;  %360 = vmatprep.mubr.f32.mxu1 %v1763_v0  ;;  %v264_v3 = vld [vmem:[#allocation9] sm:$0xff]  ;;  %v1861_v4 = vpack.c.bf16 %v267_v2, %v265_v1  ;;  %v266_v5 = vld [vmem:[#allocation9 + $0x10] sm:$0xff]  ;;  %v269_v6 = vld [vmem:[#allocation9 + $0x28] sm:$0xff] }
  0x4d   :  { %v271_v7 = vld [vmem:[#allocation9 + $0x38] sm:$0xff]  ;;  %v1863_v8 = vpack.c.bf16 %v266_v5, %v264_v3  ;;  %v268_v10 = vld [vmem:[#allocation9 + $0x20] sm:$0xff]  ;;  %v270_v11 = vld [vmem:[#allocation9 + $0x30] sm:$0xff]  ;;  %v98_v61 = vshrl.u32 %v97_v58, 7 }
  0x4e   :  { %v1865_v9 = vpack.c.bf16 %v271_v7, %v269_v6  ;;  %v273_v12 = vld [vmem:[#allocation9 + $0x48] sm:$0xff]  ;;  %1283 = vmatprep.subr.bf16.mxu1 %v1861_v4  ;;  %v275_v13 = vld [vmem:[#allocation9 + $0x58] sm:$0xff]  ;;  %v1869_v14 = vpack.c.bf16 %v270_v11, %v268_v10  ;;  %v272_v16 = vld [vmem:[#allocation9 + $0x40] sm:$0xff] }
  0x4f   :  { %1285 = vmatpush1.bf16.msra.mxu1 %v1863_v8  ;;  %v1872_v15 = vpack.c.bf16 %v275_v13, %v273_v12  ;;  %v274_v17 = vld [vmem:[#allocation9 + $0x50] sm:$0xff]  ;;  %v277_v18 = vld [vmem:[#allocation9 + $0x68] sm:$0xff]  ;;  %v279_v19 = vld [vmem:[#allocation9 + $0x78] sm:$0xff]  ;;  %v99_v62 = vsub.s32 0, %v98_v61  ;;  %v103_v1 = vsub.s32 1, %v98_v61 }
  0x50   :  { %1287 = vmatprep.subr.bf16.mxu1 %v1865_v9  ;;  %v1875_v20 = vpack.c.bf16 %v274_v17, %v272_v16  ;;  %v276_v21 = vld [vmem:[#allocation9 + $0x60] sm:$0xff]  ;;  %v92_v22 = vld [vmem:[#allocation8 + $0x8] sm:$0xff]  ;;  %v1878_v23 = vpack.c.bf16 %v279_v19, %v277_v18  ;;  %v278_v24 = vld [vmem:[#allocation9 + $0x70] sm:$0xff] }
  0x51   :  { %v281_v25 = vld [vmem:[#allocation9 + $0x88] sm:$0xff]  ;;  %v94_v26 = vld [vmem:[#allocation8 + $0x18] sm:$0xff]  ;;  %v91_v29 = vld [vmem:[#allocation8] sm:$0xff]  ;;  %v1881_v32 = vpack.c.bf16 %v278_v24, %v276_v21 }
  0x52   :  { %v283_v27 = vld [vmem:[#allocation9 + $0x98] sm:$0xff]  ;;  %v1278_v28 = vpack.c.bf16 %v94_v26, %v92_v22  ;;  %v93_v30 = vld [vmem:[#allocation8 + $0x10] sm:$0xff]  ;;  %v280_v34 = vld [vmem:[#allocation9 + $0x80] sm:$0xff] }
  0x53   :  { %1289 = vmatpush1.bf16.msra.mxu1 %v1869_v14  ;;  %v1280_v31 = vpack.c.bf16 %v93_v30, %v91_v29  ;;  %v1884_v33 = vpack.c.bf16 %v283_v27, %v281_v25  ;;  %v282_v35 = vld [vmem:[#allocation9 + $0x90] sm:$0xff]  ;;  %v83_v36 = vld [vmem:[#allocation3] sm:$0xff]  ;;  %v285_v37 = vld [vmem:[#allocation9 + $0xa8] sm:$0xff] }
  0x54   :  { %1291 = vmatprep.subr.bf16.mxu1 %v1872_v15  ;;  %1279 = vmatprep.subr.bf16.mxu0 %v1278_v28  ;;  %v287_v38 = vld [vmem:[#allocation9 + $0xb8] sm:$0xff]  ;;  %v1888_v39 = vpack.c.bf16 %v282_v35, %v280_v34  ;;  %v284_v41 = vld [vmem:[#allocation9 + $0xa0] sm:$0xff]  ;;  %v286_v42 = vld [vmem:[#allocation9 + $0xb0] sm:$0xff] }
  0x55   :  { %1281 = vmatpush1.bf16.msra.mxu0 %v1280_v31  ;;  %v1892_v40 = vpack.c.bf16 %v287_v38, %v285_v37  ;;  %v289_v43 = vld [vmem:[#allocation9 + $0xc8] sm:$0xff]  ;;  %v291_v44 = vld [vmem:[#allocation9 + $0xd8] sm:$0xff]  ;;  %v1898_v45 = vpack.c.bf16 %v286_v42, %v284_v41  ;;  %v288_v47 = vld [vmem:[#allocation9 + $0xc0] sm:$0xff] }
  0x56   :  { %1411 = vmatprep.subr.bf16.mxu0 %v1861_v4  ;;  %v1901_v46 = vpack.c.bf16 %v291_v44, %v289_v43  ;;  %v290_v48 = vld [vmem:[#allocation9 + $0xd0] sm:$0xff]  ;;  %v293_v49 = vld [vmem:[#allocation9 + $0xe8] sm:$0xff]  ;;  %v295_v50 = vld [vmem:[#allocation9 + $0xf8] sm:$0xff] }
  0x57   :  { %1293 = vmatpush1.bf16.msra.mxu1 %v1875_v20  ;;  %v1906_v51 = vpack.c.bf16 %v290_v48, %v288_v47  ;;  %v1909_v52 = vpack.c.bf16 %v295_v50, %v293_v49  ;;  %v292_v53 = vld [vmem:[#allocation9 + $0xe0] sm:$0xff]  ;;  %v294_v54 = vld [vmem:[#allocation9 + $0xf0] sm:$0xff]  ;;  %v81_v56 = vld [vmem:[#allocation6] sm:$0xff] }
  0x58   :  { %1295 = vmatprep.subr.bf16.mxu1 %v1878_v23  ;;  %1270 = vmatmul.mubr.msk.f32.vlgmr.msra.gmra.mrb[0].mxu0 %vm107_vm0, %v83_v36  ;;  %v1914_v55 = vpack.c.bf16 %v294_v54, %v292_v53  ;;  %v84_v57 = vld [vmem:[#allocation3 + $0x8] sm:$0xff]  ;;  %v95_v63 = vld [vmem:[%s2105_s4] sm:$0x3]  ;;  %v85_v13 = vld [vmem:[#allocation3 + $0x10] sm:$0xff]  ;;  %s1764_s4 = smov [#allocation12]  }
  0x59   :  { %202 = vmatprep.mubr.f32.mxu0 %v1763_v0  ;;  %1413 = vmatpush1.bf16.msra.mxu0 %v1863_v8  ;;  %v1951_v2 = vrot.slane %v95_v63, %v99_v62  ;;  %v1953_v3 = vrot.slane %v95_v63, %v103_v1  ;;  %v86_v27 = vld [vmem:[#allocation3 + $0x18] sm:$0xff]  ;;  %v87_v37 = vld [vmem:[#allocation3 + $0x20] sm:$0xff]  ;;  %v88_v42 = vld [vmem:[#allocation3 + $0x28] sm:$0xff]  ;;  %s1255_s25 = sshll.u32 %s1764_s4, 4  ;;  %s1256_s25 = int_to_ptr.vmem [resolvable:$true] %s1255_s25 }
  0x5a   :  { %1415 = vmatprep.subr.bf16.mxu0 %v1865_v9  ;;  %v89_v43 = vld [vmem:[#allocation3 + $0x30] sm:$0xff]  ;;  %v90_v44 = vld [vmem:[#allocation3 + $0x38] sm:$0xff]  ;;  %v1041_v63 = vld [vmem:[#allocation9 + $0x40] sm:$0xff]  ;;  %s1701_s26 = scalar_lea.vmem %s1256_s25, 128  ;;  %p1706_p5 = scmp.lt.s32.totalorder %s1256_s25, %s1256_s25 }
  0x5b   :  { %1297 = vmatpush1.bf16.msra.mxu1 %v1881_v32  ;;  %v1046_v1 = vld [vmem:[#allocation9 + $0x68] sm:$0xff]  ;;  %p1702_p4 = scmp.ne.s32.totalorder %s1256_s25, %s1701_s26  ;;  %p1707_p6 = scmp.lt.s32.totalorder %s1701_s26, %s1701_s26 }
  0x5c   :  { %1299 = vmatprep.subr.bf16.mxu1 %v1884_v33  ;;  %1271 = vmatmul.mubr.msk.f32.gmra.mrb[2].mxu0 %vm107_vm0, %v84_v57 }
  0x5d   :  { %1417 = vmatpush1.bf16.msra.mxu0 %v1869_v14  ;;  %208 = vmatprep.mubr.f32.mxu0 %v1763_v0  ;;  %p1708_p7 = por %p1707_p6, %p1706_p5 }
  0x5e   :  { %1419 = vmatprep.subr.bf16.mxu0 %v1872_v15 }
  0x5f   :  { %1301 = vmatpush1.bf16.msra.mxu1 %v1888_v39  ;;  %p1709_p8 = pnand %p1708_p7, %p1702_p4 }
  0x60   :  { %1303 = vmatprep.subr.bf16.mxu1 %v1892_v40  ;;  %1272 = vmatmul.mubr.msk.f32.gmra.mrb[4].mxu0 %vm107_vm0, %v85_v13  ;;  %v1050_v13 = vld [vmem:[#allocation9 + $0x88] sm:$0xff] }
  0x61   :  { %1421 = vmatpush1.bf16.msra.mxu0 %v1875_v20  ;;  %214 = vmatprep.mubr.f32.mxu0 %v1763_v0 }
  0x62   :  { %1423 = vmatprep.subr.bf16.mxu0 %v1878_v23 }
  0x63   :  { %1305 = vmatpush1.bf16.msra.mxu1 %v1898_v45 }
  0x64   :  { %1307 = vmatprep.subr.bf16.mxu1 %v1901_v46  ;;  %1273 = vmatmul.mubr.msk.f32.gmra.mrb[6].mxu0 %vm107_vm0, %v86_v27 }
  0x65   :  { %1425 = vmatpush1.bf16.msra.mxu0 %v1881_v32  ;;  %220 = vmatprep.mubr.f32.mxu0 %v1763_v0 }
  0x66   :  { %1427 = vmatprep.subr.bf16.mxu0 %v1884_v33 }
  0x67   :  { %1309 = vmatpush1.bf16.msra.mxu1 %v1906_v51 }
  0x68   :  { %1311 = vmatprep.subr.bf16.mxu1 %v1909_v52  ;;  %1274 = vmatmul.mubr.msk.f32.gmra.mrb[8].mxu0 %vm107_vm0, %v87_v37  ;;  %v1057_v37 = vld [vmem:[#allocation9 + $0xc0] sm:$0xff] }
  0x69   :  { %1429 = vmatpush1.bf16.msra.mxu0 %v1888_v39  ;;  %226 = vmatprep.mubr.f32.mxu0 %v1763_v0 }
  0x6a   :  { %1431 = vmatprep.subr.bf16.mxu0 %v1892_v40 }
  0x6b   :  { %1313 = vmatpush1.bf16.msra.mxu1 %v1914_v55 }
  0x6c   :  { %1315 = vmatprep.subr.bf16.mxu1 %v1861_v4  ;;  %1275 = vmatmul.mubr.msk.f32.gmra.mrb[10].mxu0 %vm107_vm0, %v88_v42  ;;  %v1064_v42 = vld [vmem:[#allocation9 + $0xf8] sm:$0xff] }
  0x6d   :  { %1433 = vmatpush1.bf16.msra.mxu0 %v1898_v45  ;;  %232 = vmatprep.mubr.f32.mxu0 %v1763_v0 }
  0x6e   :  { %361 = vmatmul.mubr.f32.vlgmr.msra.gmra.mrb[0].mxu1 %v81_v56  ;;  %1435 = vmatprep.subr.bf16.mxu0 %v1901_v46 }
  0x6f   :  { %1317 = vmatpush1.bf16.msra.mxu1 %v1863_v8  ;;  %469 = vmatprep.mubr.f32.mxu1 %v1763_v0 }
  0x70   :  { %1319 = vmatprep.subr.bf16.mxu1 %v1865_v9  ;;  %1276 = vmatmul.mubr.msk.f32.gmra.mrb[12].mxu0 %vm107_vm0, %v89_v43 }
  0x71   :  { %1437 = vmatpush1.bf16.msra.mxu0 %v1906_v51  ;;  %238 = vmatprep.mubr.f32.mxu0 %v1763_v0 }
  0x72   :  { %1439 = vmatprep.subr.bf16.mxu0 %v1909_v52 }
  0x73   :  { %1321 = vmatpush1.bf16.msra.mxu1 %v1869_v14 }
  0x74   :  { %1323 = vmatprep.subr.bf16.mxu1 %v1872_v15  ;;  %1277 = vmatmul.mubr.msk.f32.gmra.mrb[14].mxu0 %vm107_vm0, %v90_v44 }
  0x75   :  { %1441 = vmatpush1.bf16.msra.mxu0 %v1914_v55  ;;  %799 = vmatprep.mubr.f32.mxu0 %v1763_v0 }
  0x76   :  { %1443 = vmatprep.subr.bf16.mxu0 %v1861_v4 }
  0x77   :  { %1325 = vmatpush1.bf16.msra.mxu1 %v1875_v20 }
  0x78   :  { %1327 = vmatprep.subr.bf16.mxu1 %v1878_v23 }
  0x7b   :  { %1329 = vmatpush1.bf16.msra.mxu1 %v1881_v32 }
  0x7c   :  { %1331 = vmatprep.subr.bf16.mxu1 %v1884_v33 }
  0x7f   :  { %1333 = vmatpush1.bf16.msra.mxu1 %v1888_v39 }
  0x80   :  { %1335 = vmatprep.subr.bf16.mxu1 %v1892_v40 }
  0x83   :  { %1337 = vmatpush1.bf16.msra.mxu1 %v1898_v45 }
  0x84   :  { %1339 = vmatprep.subr.bf16.mxu1 %v1901_v46 }
  0x87   :  { %1341 = vmatpush1.bf16.msra.mxu1 %v1906_v51 }
  0x88   :  { %1343 = vmatprep.subr.bf16.mxu1 %v1909_v52 }
  0x8b   :  { %1345 = vmatpush1.bf16.msra.mxu1 %v1914_v55 }
  0x8c   :  { %1347 = vmatprep.subr.bf16.mxu1 %v1861_v4 }
 0x12b   :  { %v198_v59 = vpop.f32.mrb[0].mxu0 }
 0x12c   :  { %v200_v60 = vpop.f32.mrb[1].mxu0  ;;  %v199_v5 = vadd.f32 %v198_v59, %v1951_v2 }
 0x12d   :  { %v201_v6 = vadd.f32 %v200_v60, %v1953_v3  ;;  %v1044_v60 = vld [vmem:[#allocation9 + $0x58] sm:$0xff] }
 0x12f   :  { %v204_v16 = vpop.f32.mrb[2].mxu0 }
 0x130   :  { %v206_v17 = vpop.f32.mrb[3].mxu0  ;;  %v205_v18 = vadd.f32 %v204_v16, %v1951_v2  ;;  %v1052_v16 = vld [vmem:[#allocation9 + $0x98] sm:$0xff] }
 0x131   :  { %v207_v19 = vadd.f32 %v206_v17, %v1953_v3 }
 0x133   :  { %v210_v26 = vpop.f32.mrb[4].mxu0 }
 0x134   :  { %v212_v28 = vpop.f32.mrb[5].mxu0  ;;  %v211_v29 = vadd.f32 %v210_v26, %v1951_v2 }
 0x135   :  { %v213_v30 = vadd.f32 %v212_v28, %v1953_v3  ;;  %v1053_v28 = vld [vmem:[#allocation9 + $0xa0] sm:$0xff] }
 0x137   :  { %v216_v38 = vpop.f32.mrb[6].mxu0 }
 0x138   :  { %v218_v41 = vpop.f32.mrb[7].mxu0  ;;  %v217_v47 = vadd.f32 %v216_v38, %v1951_v2  ;;  %v1059_v38 = vld [vmem:[#allocation9 + $0xd0] sm:$0xff] }
 0x139   :  { %v219_v48 = vadd.f32 %v218_v41, %v1953_v3  ;;  %v1062_v41 = vld [vmem:[#allocation9 + $0xe8] sm:$0xff]  ;;  %v1532_v43 = vpack.c.bf16 %v1059_v38, %v1057_v37 }
 0x13a   :  { %v1534_v44 = vpack.c.bf16 %v1064_v42, %v1062_v41 }
 0x141   :  { %v362_v7 = vpop.f32.mrb[0].mxu1 }
 0x142   :  { %v367_v10 = vadd.f32 %v362_v7, %v199_v5  ;;  %v364_v11 = vpop.f32.mrb[1].mxu1  ;;  %v1048_v5 = vld [vmem:[#allocation9 + $0x78] sm:$0xff] }
 0x143   :  { %v1957_v12 = vadd.f32 %v364_v11, %v201_v6  ;;  %v1518_v7 = vpack.c.bf16 %v1048_v5, %v1046_v1  ;;  %v1047_v11 = vld [vmem:[#allocation9 + $0x70] sm:$0xff] }
 0x144   :  { %470 = vmatmul.mubr.f32.vlgmr.msra.gmra.mrb[2].mxu1 %v367_v10  ;;  %v1045_v10 = vld [vmem:[#allocation9 + $0x60] sm:$0xff] }
 0x145   :  { %1149 = vmax.xlane.f32.xlu0 %v1957_v12  ;;  %1349 = vmatpush1.bf16.msra.mxu1 %v1863_v8  ;;  %v1520_v17 = vpack.c.bf16 %v1047_v11, %v1045_v10 }
 0x146   :  { %1351 = vmatprep.subr.bf16.mxu1 %v1865_v9  ;;  %579 = vmatprep.mubr.f32.mxu1 %v1763_v0 }
 0x149   :  { %1353 = vmatpush1.bf16.msra.mxu1 %v1869_v14 }
 0x14a   :  { %1355 = vmatprep.subr.bf16.mxu1 %v1872_v15 }
 0x14d   :  { %1357 = vmatpush1.bf16.msra.mxu1 %v1875_v20 }
 0x14e   :  { %1359 = vmatprep.subr.bf16.mxu1 %v1878_v23 }
 0x151   :  { %1361 = vmatpush1.bf16.msra.mxu1 %v1881_v32 }
 0x152   :  { %1363 = vmatprep.subr.bf16.mxu1 %v1884_v33 }
 0x155   :  { %1365 = vmatpush1.bf16.msra.mxu1 %v1888_v39 }
 0x156   :  { %1367 = vmatprep.subr.bf16.mxu1 %v1892_v40 }
 0x159   :  { %1369 = vmatpush1.bf16.msra.mxu1 %v1898_v45 }
 0x15a   :  { %1371 = vmatprep.subr.bf16.mxu1 %v1901_v46 }
 0x15d   :  { %1373 = vmatpush1.bf16.msra.mxu1 %v1906_v51 }
 0x15e   :  { %1375 = vmatprep.subr.bf16.mxu1 %v1909_v52 }
 0x161   :  { %1377 = vmatpush1.bf16.msra.mxu1 %v1914_v55 }
 0x162   :  { %1379 = vmatprep.subr.bf16.mxu1 %v1861_v4 }
 0x217   :  { %v471_v21 = vpop.f32.mrb[2].mxu1 }
 0x218   :  { %v476_v22 = vadd.f32 %v471_v21, %v205_v18  ;;  %v473_v24 = vpop.f32.mrb[3].mxu1  ;;  %v1522_v18 = vpack.c.bf16 %v1052_v16, %v1050_v13  ;;  %v1051_v21 = vld [vmem:[#allocation9 + $0x90] sm:$0xff] }
 0x219   :  { %v1981_v25 = vadd.f32 %v473_v24, %v207_v19  ;;  %v1049_v19 = vld [vmem:[#allocation9 + $0x80] sm:$0xff]  ;;  %v1056_v24 = vld [vmem:[#allocation9 + $0xb8] sm:$0xff] }
 0x21a   :  { %580 = vmatmul.mubr.f32.vlgmr.msra.gmra.mrb[4].mxu1 %v476_v22  ;;  %v1054_v22 = vld [vmem:[#allocation9 + $0xa8] sm:$0xff]  ;;  %v1524_v26 = vpack.c.bf16 %v1051_v21, %v1049_v19 }
 0x21b   :  { %1151 = vmax.xlane.f32.xlu0 %v1981_v25  ;;  %1381 = vmatpush1.bf16.msra.mxu1 %v1863_v8  ;;  %v1526_v27 = vpack.c.bf16 %v1056_v24, %v1054_v22 }
 0x21c   :  { %1383 = vmatprep.subr.bf16.mxu1 %v1865_v9  ;;  %689 = vmatprep.mubr.f32.mxu1 %v1763_v0 }
 0x21f   :  { %1385 = vmatpush1.bf16.msra.mxu1 %v1869_v14 }
 0x220   :  { %1387 = vmatprep.subr.bf16.mxu1 %v1872_v15 }
 0x223   :  { %1389 = vmatpush1.bf16.msra.mxu1 %v1875_v20 }
 0x224   :  { %1391 = vmatprep.subr.bf16.mxu1 %v1878_v23 }
 0x227   :  { %1393 = vmatpush1.bf16.msra.mxu1 %v1881_v32 }
 0x228   :  { %1395 = vmatprep.subr.bf16.mxu1 %v1884_v33 }
 0x22b   :  { %1397 = vmatpush1.bf16.msra.mxu1 %v1888_v39 }
 0x22c   :  { %1399 = vmatprep.subr.bf16.mxu1 %v1892_v40 }
 0x22f   :  { %1401 = vmatpush1.bf16.msra.mxu1 %v1898_v45 }
 0x230   :  { %1403 = vmatprep.subr.bf16.mxu1 %v1901_v46 }
 0x233   :  { %1405 = vmatpush1.bf16.msra.mxu1 %v1906_v51 }
 0x234   :  { %1407 = vmatprep.subr.bf16.mxu1 %v1909_v52 }
 0x237   :  { %1409 = vmatpush1.bf16.msra.mxu1 %v1914_v55 }
 0x2ed   :  { %v581_v31 = vpop.f32.mrb[4].mxu1 }
 0x2ee   :  { %v586_v34 = vadd.f32 %v581_v31, %v211_v29  ;;  %v583_v35 = vpop.f32.mrb[5].mxu1  ;;  %v1055_v29 = vld [vmem:[#allocation9 + $0xb0] sm:$0xff]  ;;  %v1060_v31 = vld [vmem:[#allocation9 + $0xd8] sm:$0xff] }
 0x2ef   :  { %v2004_v36 = vadd.f32 %v583_v35, %v213_v30  ;;  %v1058_v30 = vld [vmem:[#allocation9 + $0xc8] sm:$0xff] }
 0x2f0   :  { %690 = vmatmul.mubr.f32.vlgmr.msra.gmra.mrb[6].mxu1 %v586_v34  ;;  %v1528_v34 = vpack.c.bf16 %v1055_v29, %v1053_v28  ;;  %v1530_v35 = vpack.c.bf16 %v1060_v31, %v1058_v30 }
 0x2f1   :  { %1153 = vmax.xlane.f32.xlu1 %v2004_v36 }
 0x3c3   :  { %v691_v49 = vpop.f32.mrb[6].mxu1 }
 0x3c4   :  { %v696_v50 = vadd.f32 %v691_v49, %v217_v47  ;;  %v693_v53 = vpop.f32.mrb[7].mxu1  ;;  %v1061_v47 = vld [vmem:[#allocation9 + $0xe0] sm:$0xff] }
 0x3c5   :  { %v2017_v54 = vadd.f32 %v693_v53, %v219_v48  ;;  %v1063_v48 = vld [vmem:[#allocation9 + $0xf0] sm:$0xff] }
 0x3c6   :  { %800 = vmatmul.mubr.f32.vlgmr.msra.gmra.mrb[8].mxu0 %v696_v50  ;;  %v1536_v49 = vpack.c.bf16 %v1063_v48, %v1061_v47  ;;  %v1150_v50 = vpop.xlane.xlu0 %1149 }
 0x3c7   :  { %1155 = vmax.xlane.f32.xlu1 %v2017_v54  ;;  %1445 = vmatpush1.bf16.msra.mxu0 %v1863_v8  ;;  %v1165_v53 = vsub.f32 %v1957_v12, %v1150_v50 }
 0x3c8   :  { %1447 = vmatprep.subr.bf16.mxu0 %v1865_v9  ;;  %909 = vmatprep.mubr.f32.mxu0 %v1763_v0 }
 0x3cb   :  { %1449 = vmatpush1.bf16.msra.mxu0 %v1869_v14 }
 0x3cc   :  { %1451 = vmatprep.subr.bf16.mxu0 %v1872_v15 }
 0x3cf   :  { %1453 = vmatpush1.bf16.msra.mxu0 %v1875_v20 }
 0x3d0   :  { %1455 = vmatprep.subr.bf16.mxu0 %v1878_v23 }
 0x3d3   :  { %1457 = vmatpush1.bf16.msra.mxu0 %v1881_v32 }
 0x3d4   :  { %1459 = vmatprep.subr.bf16.mxu0 %v1884_v33 }
 0x3d7   :  { %1461 = vmatpush1.bf16.msra.mxu0 %v1888_v39 }
 0x3d8   :  { %1463 = vmatprep.subr.bf16.mxu0 %v1892_v40 }
 0x3db   :  { %1465 = vmatpush1.bf16.msra.mxu0 %v1898_v45 }
 0x3dc   :  { %1467 = vmatprep.subr.bf16.mxu0 %v1901_v46 }
 0x3df   :  { %1469 = vmatpush1.bf16.msra.mxu0 %v1906_v51 }
 0x3e0   :  { %1471 = vmatprep.subr.bf16.mxu0 %v1909_v52 }
 0x3e3   :  { %1473 = vmatpush1.bf16.msra.mxu0 %v1914_v55 }
 0x3e4   :  { %1475 = vmatprep.subr.bf16.mxu0 %v1861_v4 }
 0x499   :  { %v801_v56 = vpop.f32.mrb[8].mxu0 }
 0x49a   :  { %v1554_v57 = vadd.f32 %v801_v56, %v1951_v2  ;;  %v803_v58 = vpop.f32.mrb[9].mxu0  ;;  %v1152_v56 = vpop.xlane.xlu0 %1151 }
 0x49b   :  { %v2039_v59 = vadd.f32 %v803_v58, %v1953_v3  ;;  %v1173_v58 = vmul.f32 1.442695, %v1165_v53  ;;  %v1166_v11 = vsub.f32 %v1981_v25, %v1152_v56 }
 0x49c   :  { %910 = vmatmul.mubr.f32.vlgmr.msra.gmra.mrb[10].mxu0 %v1554_v57  ;;  %v1154_v57 = vpop.xlane.xlu1 %1153 }
 0x49d   :  { %1157 = vmax.xlane.f32.xlu0 %v2039_v59  ;;  %1477 = vmatpush1.bf16.msra.mxu0 %v1863_v8  ;;  %1581 = vpow2.f32 %v1173_v58  ;;  %v1175_v16 = vmul.f32 1.442695, %v1166_v11 }
 0x49e   :  { %1479 = vmatprep.subr.bf16.mxu0 %v1865_v9  ;;  %1019 = vmatprep.mubr.f32.mxu0 %v1763_v0 }
 0x4a0   :  { %v1156_v13 = vpop.xlane.xlu1 %1155 }
 0x4a1   :  { %1481 = vmatpush1.bf16.msra.mxu0 %v1869_v14 }
 0x4a2   :  { %1483 = vmatprep.subr.bf16.mxu0 %v1872_v15  ;;  %v1034_v15 = vld [vmem:[#allocation9 + $0x8] sm:$0xff] }
 0x4a5   :  { %1485 = vmatpush1.bf16.msra.mxu0 %v1875_v20  ;;  %v1036_v20 = vld [vmem:[#allocation9 + $0x18] sm:$0xff] }
 0x4a6   :  { %1487 = vmatprep.subr.bf16.mxu0 %v1878_v23  ;;  %v1033_v23 = vld [vmem:[#allocation9] sm:$0xff] }
 0x4a7   :  { %v1582_v12 = vpop.eup %1581 }
 0x4a9   :  { %1489 = vmatpush1.bf16.msra.mxu0 %v1881_v32  ;;  %v1506_v32 = vpack.c.bf16 %v1036_v20, %v1034_v15 }
 0x4aa   :  { %1491 = vmatprep.subr.bf16.mxu0 %v1884_v33  ;;  %v1035_v33 = vld [vmem:[#allocation9 + $0x10] sm:$0xff] }
 0x4ad   :  { %1493 = vmatpush1.bf16.msra.mxu0 %v1888_v39  ;;  %v1038_v39 = vld [vmem:[#allocation9 + $0x28] sm:$0xff] }
 0x4ae   :  { %1495 = vmatprep.subr.bf16.mxu0 %v1892_v40  ;;  %v1040_v40 = vld [vmem:[#allocation9 + $0x38] sm:$0xff] }
 0x4b1   :  { %1497 = vmatpush1.bf16.msra.mxu0 %v1898_v45  ;;  %v1508_v45 = vpack.c.bf16 %v1035_v33, %v1033_v23 }
 0x4b2   :  { %1499 = vmatprep.subr.bf16.mxu0 %v1901_v46  ;;  %v1510_v46 = vpack.c.bf16 %v1040_v40, %v1038_v39 }
 0x4b5   :  { %1501 = vmatpush1.bf16.msra.mxu0 %v1906_v51  ;;  %v1037_v51 = vld [vmem:[#allocation9 + $0x20] sm:$0xff] }
 0x4b6   :  { %1503 = vmatprep.subr.bf16.mxu0 %v1909_v52  ;;  %v1039_v52 = vld [vmem:[#allocation9 + $0x30] sm:$0xff] }
 0x4b7   :  { %v1512_v61 = vpack.c.bf16 %v1039_v52, %v1037_v51 }
 0x4b9   :  { %1505 = vmatpush1.bf16.msra.mxu0 %v1914_v55  ;;  %v1042_v55 = vld [vmem:[#allocation9 + $0x48] sm:$0xff] }
 0x4ba   :  { %1507 = vmatprep.subr.bf16.mxu0 %v1506_v32  ;;  %v1514_v62 = vpack.c.bf16 %v1044_v60, %v1042_v55 }
 0x56f   :  { %v911_v4 = vpop.f32.mrb[10].mxu0 }
 0x570   :  { %v1556_v8 = vadd.f32 %v911_v4, %v1951_v2  ;;  %v913_v9 = vpop.f32.mrb[11].mxu0  ;;  %v1167_v4 = vsub.f32 %v2004_v36, %v1154_v57 }
 0x571   :  { %v2060_v14 = vadd.f32 %v913_v9, %v1953_v3 }
 0x572   :  { %1020 = vmatmul.mubr.f32.vlgmr.msra.gmra.mrb[12].mxu0 %v1556_v8  ;;  %v1158_v8 = vpop.xlane.xlu0 %1157  ;;  %v1177_v9 = vmul.f32 1.442695, %v1167_v4 }
 0x573   :  { %1159 = vmax.xlane.f32.xlu1 %v2060_v14  ;;  %1129 = vmatprep.mubr.f32.mxu0 %v1763_v0  ;;  %v1043_v0 = vld [vmem:[#allocation9 + $0x50] sm:$0xff]  ;;  %v1169_v15 = vsub.f32 %v2039_v59, %v1158_v8 }
 0x574   :  { %1509 = vmatpush1.bf16.msra.mxu0 %v1508_v45  ;;  %v1516_v6 = vpack.c.bf16 %v1043_v0, %v1041_v63  ;;  %1583 = vpow2.f32 %v1177_v9 }
 0x575   :  { %1511 = vmatprep.subr.bf16.mxu0 %v1510_v46  ;;  %v1181_v23 = vmul.f32 1.442695, %v1169_v15 }
 0x577   :  { %1585 = vpow2.f32 %v1181_v23 }
 0x578   :  { %1513 = vmatpush1.bf16.msra.mxu0 %v1512_v61 }
 0x579   :  { %1515 = vmatprep.subr.bf16.mxu0 %v1514_v62 }
 0x57c   :  { %1517 = vmatpush1.bf16.msra.mxu0 %v1516_v6 }
 0x57d   :  { %1519 = vmatprep.subr.bf16.mxu0 %v1518_v7 }
 0x57e   :  { %v1584_v40 = vpop.eup %1583 }
 0x580   :  { %1521 = vmatpush1.bf16.msra.mxu0 %v1520_v17  ;;  %v1168_v17 = vsub.f32 %v2017_v54, %v1156_v13 }
 0x581   :  { %1523 = vmatprep.subr.bf16.mxu0 %v1522_v18  ;;  %v1586_v36 = vpop.eup %1585 }
 0x582   :  { %v1179_v19 = vmul.f32 1.442695, %v1168_v17 }
 0x584   :  { %1525 = vmatpush1.bf16.msra.mxu0 %v1524_v26 }
 0x585   :  { %1527 = vmatprep.subr.bf16.mxu0 %v1526_v27 }
 0x588   :  { %1529 = vmatpush1.bf16.msra.mxu0 %v1528_v34 }
 0x589   :  { %1531 = vmatprep.subr.bf16.mxu0 %v1530_v35 }
 0x58c   :  { %1533 = vmatpush1.bf16.msra.mxu0 %v1532_v43 }
 0x58d   :  { %1535 = vmatprep.subr.bf16.mxu0 %v1534_v44 }
 0x590   :  { %1537 = vmatpush1.bf16.msra.mxu0 %v1536_v49 }
 0x600   :  { %v1160_v18 = vpop.xlane.xlu1 %1159 }
 0x601   :  { %v1170_v21 = vsub.f32 %v2060_v14, %v1160_v18 }
 0x603   :  { %v1183_v24 = vmul.f32 1.442695, %v1170_v21 }
 0x645   :  { %v1021_v20 = vpop.f32.mrb[12].mxu0 }
 0x646   :  { %v1558_v32 = vadd.f32 %v1021_v20, %v1951_v2  ;;  %v1023_v33 = vpop.f32.mrb[13].mxu0 }
 0x647   :  { %v1559_v39 = vadd.f32 %v1023_v33, %v1953_v3 }
 0x648   :  { %1130 = vmatmul.mubr.f32.vlgmr.msra.gmra.mrb[14].mxu0 %v1558_v32 }
 0x649   :  { %1161 = vmax.xlane.f32.xlu0 %v1559_v39 }
 0x64d   :  { %1189 = vadd.xlane.f32.xlu0 %v1582_v12 }
 0x651   :  { %1193 = vadd.xlane.f32.xlu0 %v1584_v40 }
 0x655   :  { %1197 = vadd.xlane.f32.xlu0 %v1586_v36 }
 0x6d6   :  { %v1162_v45 = vpop.xlane.xlu0 %1161 }
 0x6d7   :  { %v1171_v46 = vsub.f32 %v1559_v39, %v1162_v45 }
 0x6d9   :  { %v1185_v59 = vmul.f32 1.442695, %v1171_v46 }
 0x6da   :  { %v1190_v51 = vpop.xlane.xlu0 %1189 }
 0x6db   :  { %1587 = vpow2.f32 %v1185_v59 }
 0x6dc   :  { %1589 = vlog2.f32 %v1190_v51 }
 0x6de   :  { %v1194_v52 = vpop.xlane.xlu0 %1193 }
 0x6df   :  { %1591 = vlog2.f32 %v1194_v52 }
 0x6e2   :  { %v1198_v55 = vpop.xlane.xlu0 %1197 }
 0x6e3   :  { %1593 = vlog2.f32 %v1198_v55 }
 0x6e4   :  { %1595 = vpow2.f32 %v1175_v16 }
 0x6e5   :  { %v1588_v60 = vpop.eup %1587  ;;  %1597 = vpow2.f32 %v1179_v19 }
 0x6e6   :  { %v1590_v61 = vpop.eup %1589  ;;  %1201 = vadd.xlane.f32.xlu0 %v1588_v60  ;;  %1599 = vpow2.f32 %v1183_v24 }
 0x6e7   :  { %v1206_v62 = vmul.f32 0.6931472, %v1590_v61 }
 0x6e9   :  { %v1592_v63 = vpop.eup %1591  ;;  %v1221_v0 = vsub.f32 %v1165_v53, %v1206_v62 }
 0x6ea   :  { %v1210_v1 = vmul.f32 0.6931472, %v1592_v63 }
 0x6eb   :  { %1229 = vst [vmem:[#allocation11] sm:$0xff] %v1221_v0 }
 0x6ec   :  { %v1223_v5 = vsub.f32 %v1167_v4, %v1210_v1 }
 0x6ed   :  { %v1594_v6 = vpop.eup %1593 }
 0x6ee   :  { %1231 = vst [vmem:[#allocation11 + $0x10] sm:$0xff] %v1223_v5  ;;  %v1214_v7 = vmul.f32 0.6931472, %v1594_v6  ;;  %v1596_v25 = vpop.eup %1595 }
 0x6ef   :  { %v1598_v29 = vpop.eup %1597 }
 0x6f0   :  { %v1225_v10 = vsub.f32 %v1169_v15, %v1214_v7  ;;  %v1600_v54 = vpop.eup %1599 }
 0x6f2   :  { %1233 = vst [vmem:[#allocation11 + $0x20] sm:$0xff] %v1225_v10 }
 0x71b   :  { %v1131_v22 = vpop.f32.mrb[14].mxu0 }
 0x71c   :  { %v1560_v26 = vadd.f32 %v1131_v22, %v1951_v2  ;;  %v1133_v27 = vpop.f32.mrb[15].mxu0 }
 0x71d   :  { %v1561_v28 = vadd.f32 %v1133_v27, %v1953_v3 }
 0x71e   :  { %1140 = vst [vmem:[#allocation12] sm:$0xff] %v1560_v26 }
 0x71f   :  { %1163 = vmax.xlane.f32.xlu1 %v1561_v28 }
 0x723   :  { %1191 = vadd.xlane.f32.xlu1 %v1596_v25 }
 0x727   :  { %1195 = vadd.xlane.f32.xlu1 %v1598_v29 }
 0x72b   :  { %1199 = vadd.xlane.f32.xlu1 %v1600_v54 }
 0x773   :  { %v1202_v30 = vpop.xlane.xlu0 %1201 }
 0x774   :  { %1601 = vlog2.f32 %v1202_v30 }
 0x77e   :  { %v1602_v14 = vpop.eup %1601 }
 0x77f   :  { %v1218_v31 = vmul.f32 0.6931472, %v1602_v14 }
 0x781   :  { %v1227_v34 = vsub.f32 %v1171_v46, %v1218_v31 }
 0x783   :  { %1235 = vst [vmem:[#allocation11 + $0x30] sm:$0xff] %v1227_v34 }
 0x7ac   :  { %v1164_v35 = vpop.xlane.xlu1 %1163 }
 0x7ad   :  { %v1172_v2 = vsub.f32 %v1561_v28, %v1164_v35 }
 0x7af   :  { %v1187_v37 = vmul.f32 1.442695, %v1172_v2 }
 0x7b0   :  { %v1192_v38 = vpop.xlane.xlu1 %1191 }
 0x7b1   :  { %1603 = vpow2.f32 %v1187_v37 }
 0x7b2   :  { %1605 = vlog2.f32 %v1192_v38 }
 0x7b4   :  { %v1196_v3 = vpop.xlane.xlu1 %1195 }
 0x7b5   :  { %1607 = vlog2.f32 %v1196_v3 }
 0x7b8   :  { %v1200_v41 = vpop.xlane.xlu1 %1199 }
 0x7b9   :  { %1609 = vlog2.f32 %v1200_v41 }
 0x7bb   :  { %v1604_v42 = vpop.eup %1603 }
 0x7bc   :  { %v1606_v43 = vpop.eup %1605  ;;  %1203 = vadd.xlane.f32.xlu1 %v1604_v42 }
 0x7bd   :  { %v1208_v44 = vmul.f32 0.6931472, %v1606_v43 }
 0x7bf   :  { %v1608_v47 = vpop.eup %1607  ;;  %v1222_v48 = vsub.f32 %v1166_v11, %v1208_v44 }
 0x7c0   :  { %v1212_v49 = vmul.f32 0.6931472, %v1608_v47 }
 0x7c1   :  { %1230 = vst [vmem:[#allocation11 + $0x8] sm:$0xff] %v1222_v48 }
 0x7c2   :  { %v1224_v50 = vsub.f32 %v1168_v17, %v1212_v49 }
 0x7c3   :  { %v1610_v53 = vpop.eup %1609 }
 0x7c4   :  { %1232 = vst [vmem:[#allocation11 + $0x18] sm:$0xff] %v1224_v50  ;;  %v1216_v56 = vmul.f32 0.6931472, %v1610_v53 }
 0x7c6   :  { %v1226_v57 = vsub.f32 %v1170_v21, %v1216_v56 }
 0x7c8   :  { %1234 = vst [vmem:[#allocation11 + $0x28] sm:$0xff] %v1226_v57 }
 0x7c9   :  { %1712 = shalt.err (!%p1709_p8)
}
 0x7ca   :  { %s1713_s29 = scalar_lea.hbm %s2107_s6, 128 }
 0x7cb   :  { %p1714_p9 = scmp.ne.s32.totalorder %s2107_s6, %s1713_s29  ;;  %p1717_p10 = scmp.lt.u32.totalorder %s1713_s29, %s2107_s6 }
 0x7cd   :  { %p1719_p11 = pnand %p1717_p10, %p1714_p9 }
 0x7cf   :  { %1722 = shalt.err (!%p1719_p11)
}
 0x7d0   :  { %1258 = dma.vmem_to_hbm [thread:$0]  %s1256_s25, 128, %s2107_s6, [#allocation13]  }
 0x7d1   :  { %s1765_s10 = smov [#allocation11]  }
 0x7d2   :  { %s1242_s11 = sshll.u32 %s1765_s10, 4  ;;  %s1243_s11 = int_to_ptr.vmem [resolvable:$true] %s1242_s11 }
 0x7d3   :  { %s1723_s12 = scalar_lea.vmem %s1243_s11, 1024  ;;  %p1728_p13 = scmp.lt.s32.totalorder %s1243_s11, %s1243_s11 }
 0x7d4   :  { %p1724_p12 = scmp.ne.s32.totalorder %s1243_s11, %s1723_s12  ;;  %p1729_p0 = scmp.lt.s32.totalorder %s1723_s12, %s1723_s12 }
 0x7d6   :  { %p1730_p1 = por %p1729_p0, %p1728_p13 }
 0x7d8   :  { %p1731_p2 = pnand %p1730_p1, %p1724_p12 }
 0x849   :  { %v1204_v58 = vpop.xlane.xlu1 %1203 }
 0x84a   :  { %1611 = vlog2.f32 %v1204_v58 }
 0x854   :  { %v1612_v4 = vpop.eup %1611 }
 0x855   :  { %v1220_v8 = vmul.f32 0.6931472, %v1612_v4 }
 0x857   :  { %v1228_v9 = vsub.f32 %v1172_v2, %v1220_v8 }
 0x859   :  { %1236 = vst [vmem:[#allocation11 + $0x38] sm:$0xff] %v1228_v9 }
 0x85a   :  { %1734 = shalt.err (!%p1731_p2)
}
 0x85b   :  { %s1735_s6 = scalar_lea.hbm %s2106_s5, 1024 }
 0x85c   :  { %p1736_p3 = scmp.ne.s32.totalorder %s2106_s5, %s1735_s6  ;;  %p1739_p4 = scmp.lt.u32.totalorder %s1735_s6, %s2106_s5 }
 0x85e   :  { %p1741_p5 = pnand %p1739_p4, %p1736_p3 }
 0x860   :  { %1744 = shalt.err (!%p1741_p5)
}
 0x861   :  { %1248 = dma.vmem_to_hbm [thread:$0]  %s1243_s11, 1024, %s2106_s5, [#allocation5], %s1757_s1, %s1757_s1, %s1758_s19  }
 0x862   :  { %1751 = dma.done.wait [#allocation5], 1024  }
 0x863   :  { %1752 = vsyncadd [#allocation5], 4294966272 }
 0x864   :  { %1753 = dma.done.wait [#allocation13], 128  }
 0x865   :  { %1754 = vsyncadd [#allocation13], 4294967168 }
 0x866   :  { %1265 = vsyncpa [#allocation4], 1 }
 0x867   :  { %1266 = vsyncpa [#allocation7], 1 }
 0x868   :  { %1267 = vsyncpa [#allocation10], 1 }
 0x869   :  { %1268 = vsyncpa [#allocation5], 1 }
 0x86a   :  { %1269 = vsyncpa [#allocation13], 1 }

</bundles_post_ra>
